<compile_context>
chip_gen: v5e
topology: v5e:2x2
jax: 0.10.0
libtpu: 0.0.40
codegen_flags: <defaults>
</compile_context>

<pallas_src>
import jax
import jax.numpy as jnp
from jax.experimental import pallas as pl
from jax.experimental.pallas import tpu as pltpu

_LANE_CHOICES = (1024, 512, 256, 128)   # lane-dense last-dim candidates


def _max_tile_bytes():
    """Per-tile byte budget safe for this chip's default scoped VMEM."""
    try:
        kind = jax.devices()[0].device_kind.lower()
    except Exception:
        kind = ""
    if "v6" in kind or "v7" in kind:
        # 4 MiB/tile -> 16 MiB double-buffered in+out, fits 32 MiB scoped VMEM.
        return 4 * 1024 * 1024
    # v5e (and unknown chips): 2 MiB/tile -> 8 MiB, fits 16 MiB default scoped.
    return 2 * 1024 * 1024


def _poly_kernel(p_ref, u_ref, o_ref):
    # p_ref: SMEM (3,) f32 scalars; u_ref / o_ref: VMEM (tile_r, lanes) tiles.
    u = u_ref[...].astype(jnp.float32)
    # Horner: (p0*u + p1)*u + p2  ==  p0*u^2 + p1*u + p2  (one fewer vmul).
    y = (u * p_ref[0] + p_ref[1]) * u + p_ref[2]
    o_ref[...] = y.astype(o_ref.dtype)


def static_nonlin_poly(u, p_coeff):
    """y = p[0]*u**2 + p[1]*u + p[2], elementwise; same shape/dtype as u."""
    orig_shape = u.shape
    dtype = u.dtype
    itemsize = jnp.dtype(dtype).itemsize
    sub = max(8, 32 // itemsize)            # dtype-aware sublane multiple

    p3 = p_coeff[:3].astype(jnp.float32)    # only degree 2..0 coeffs are used

    flat = u.reshape(-1)
    n = flat.shape[0]

    # Widest lane-dense last dim dividing n exactly -> no pad, no output slice.
    lanes, ragged = _LANE_CHOICES[0], True
    for cand in _LANE_CHOICES:
        if n % cand == 0:
            lanes, ragged = cand, False
            break

    rows = pl.cdiv(n, lanes)
    if ragged:                               # pad only the final partial row
        flat = jnp.pad(flat, (0, rows * lanes - n))
    u2d = flat.reshape(rows, lanes)

    # Row tiling: byte-capped per chip, >=2 grid steps when rows allow (feeds
    # both TensorCores on v7x), sublane-multiple rows; final block may be
    # partial (Pallas masks OOB output writes).
    max_rows = max(sub, (_max_tile_bytes() // (lanes * itemsize)) // sub * sub)
    n_split = 2 if rows >= 2 * sub else 1
    tile_r = min(max_rows, pl.cdiv(pl.cdiv(rows, n_split), sub) * sub)
    if tile_r >= rows:
        tile_r = rows                        # block == full array extent
    grid = (pl.cdiv(rows, tile_r),)

    out2d = pl.pallas_call(
        _poly_kernel,
        out_shape=jax.ShapeDtypeStruct((rows, lanes), dtype),
        grid=grid,
        in_specs=[
            pl.BlockSpec(memory_space=pltpu.SMEM),             # coefficients
            pl.BlockSpec((tile_r, lanes), lambda i: (i, 0)),   # dense tiles
        ],
        out_specs=pl.BlockSpec((tile_r, lanes), lambda i: (i, 0)),
        compiler_params=pltpu.CompilerParams(
            dimension_semantics=("parallel",),
        ),
    )(p3, u2d)

    if ragged:
        return out2d.reshape(-1)[:n].reshape(orig_shape)
    return out2d.reshape(orig_shape)


if __name__ == "__main__":
    key = jax.random.PRNGKey(0)
    k_u, k_p = jax.random.split(key)

    def ref_fn(u, p):
        return u**2 * p[0] + u * p[1] + p[2]

    # Shapes consistent with the dynoNet Wiener usage: (batch, seq, 1).
    batch, seq, n_p = 2, 256, 3
    u = jax.random.normal(k_u, (batch, seq, 1), dtype=jnp.float32)
    # torch.nn.Parameter(torch.zeros(n_p)) -- synthetic non-zero values so the
    # forward pass is non-trivial to verify.
    p_coeff = jax.random.normal(k_p, (n_p,), dtype=jnp.float32)

    # Main case: f32, element count divisible by 128 -> no-pad fast path.
    y = jax.block_until_ready(static_nonlin_poly(u, p_coeff))
    assert y.shape == u.shape and y.dtype == u.dtype
    assert jnp.allclose(y, ref_fn(u, p_coeff), rtol=1e-6, atol=1e-6)

    # Ragged case: exercises the pad-one-row + trailing-slice path.
    u_rag = jax.random.normal(k_u, (3, 37), dtype=jnp.float32)
    y_rag = jax.block_until_ready(static_nonlin_poly(u_rag, p_coeff))
    assert y_rag.shape == u_rag.shape
    assert jnp.allclose(y_rag, ref_fn(u_rag, p_coeff), rtol=1e-6, atol=1e-6)

    # bf16 I/O case: halves HBM traffic; compute stays in f32 inside the kernel.
    u_bf = jax.random.normal(k_u, (2, 8, 128), dtype=jnp.bfloat16)
    y_bf = jax.block_until_ready(static_nonlin_poly(u_bf, p_coeff))
    ref_bf = ref_fn(u_bf.astype(jnp.float32), p_coeff)
    assert y_bf.shape == u_bf.shape and y_bf.dtype == jnp.bfloat16
    assert jnp.allclose(y_bf.astype(jnp.float32), ref_bf, rtol=2e-2, atol=2e-2)

    print("KERNEL_OK")
</pallas_src>

<mosaic_0001>
module attributes {stable_mosaic.version = 11 : i64} {
  func.func @_poly_kernel(%arg0: i32, %arg1: memref<3xf32, #tpu.memory_space<smem>>, %arg2: memref<1x512xf32, #tpu.memory_space<vmem>>, %arg3: memref<1x512xf32, #tpu.memory_space<vmem>>) attributes {dimension_semantics = [#tpu.dimension_semantics<parallel>], iteration_bounds = array<i64: 1>, scalar_prefetch = 0 : i64, scratch_operands = 0 : i64, tpu.core_type = #tpu.core_type<tc>, window_params = [{transform_indices = @transform_0, window_bounds = array<i64: 3>}, {transform_indices = @transform_1, window_bounds = array<i64: 1, 512>}, {transform_indices = @transform_2, window_bounds = array<i64: 1, 512>}]} {
    %c0 = arith.constant 0 : index
    %c0_0 = arith.constant 0 : index
    %0 = vector.load %arg2[%c0, %c0_0] : memref<1x512xf32, #tpu.memory_space<vmem>>, vector<1x512xf32>
    %c0_1 = arith.constant 0 : index
    %1 = memref.load %arg1[%c0_1] : memref<3xf32, #tpu.memory_space<smem>>
    %2 = vector.broadcast %1 : f32 to vector<1x512xf32>
    %3 = arith.mulf %0, %2 : vector<1x512xf32>
    %c1 = arith.constant 1 : index
    %4 = memref.load %arg1[%c1] : memref<3xf32, #tpu.memory_space<smem>>
    %5 = vector.broadcast %4 : f32 to vector<1x512xf32>
    %6 = arith.addf %3, %5 : vector<1x512xf32>
    %7 = arith.mulf %6, %0 : vector<1x512xf32>
    %c2 = arith.constant 2 : index
    %8 = memref.load %arg1[%c2] : memref<3xf32, #tpu.memory_space<smem>>
    %9 = vector.broadcast %8 : f32 to vector<1x512xf32>
    %10 = arith.addf %7, %9 : vector<1x512xf32>
    %c0_2 = arith.constant 0 : index
    %c0_3 = arith.constant 0 : index
    %11 = vector.load %arg3[%c0_2, %c0_3] : memref<1x512xf32, #tpu.memory_space<vmem>>, vector<1x512xf32>
    tpu.vector_store %arg3[%c0_2, %c0_3], %10 {strides = array<i32>} : memref<1x512xf32, #tpu.memory_space<vmem>>, vector<1x512xf32>,
    return
  }
  func.func @transform_0(%arg0: i32) -> i32 {
    %c0_i32 = arith.constant 0 : i32
    %c0_i32_0 = arith.constant 0 : i32
    return %c0_i32 : i32
  }
  func.func @transform_1(%arg0: i32) -> (i32, i32) {
    %c0_i32 = arith.constant 0 : i32
    %c0_i32_0 = arith.constant 0 : i32
    return %arg0, %c0_i32 : i32, i32
  }
  func.func @transform_2(%arg0: i32) -> (i32, i32) {
    %c0_i32 = arith.constant 0 : i32
    %c0_i32_0 = arith.constant 0 : i32
    return %arg0, %c0_i32 : i32, i32
  }
}

</mosaic_0001>

<bundles_post_ra>
// kernel: tpu_custom_call.1
= control target key start
LH: loop header
LB: loop body
LE: loop exit
PB: predicated region body
PF: predicated region fallthrough
CT: control target
= control target key end

     0   :  { %7 = vsyncpa [#allocation5], 0  ;;  %s171_s0 = inlined_call_operand.hbm [shape: f32[3], index: 0, kind: input, shape index: {}]   ;;  %s172_s1 = inlined_call_operand.hbm [shape: f32[1,512], index: 1, kind: input, shape index: {}]   ;;  %s173_s2 = inlined_call_operand.hbm [shape: f32[1,512], index: 2, kind: output, shape index: {}]  }
   0x1   :  { %8 = vsyncpa [#allocation3], 0 }
   0x2   :  { %9 = vsyncpa [#allocation4], 0  ;;  %s15_s11 = sshll.u32 %s171_s0, 4  ;;  %s24_s14 = sshll.u32 %s172_s1, 4  ;;  %s16_s11 = int_to_ptr.hbm [resolvable:$true] %s15_s11  ;;  %s25_s14 = int_to_ptr.hbm [resolvable:$true] %s24_s14 }
   0x3   :  { %s144_s15 = smov [#allocation2]   ;;  %s145_s16 = smov [#allocation6]  }
   0x4   :  { %18 = dma.hbm_to_smem %s16_s11, 16, %s144_s15, [#allocation5]  }
   0x5   :  { %s26_s17 = sshll.u32 %s145_s16, 4  ;;  %s27_s17 = int_to_ptr.vmem [resolvable:$true] %s26_s17 }
   0x6   :  { %29 = dma.hbm_to_vmem [thread:$0]  %s25_s14, 64, %s27_s17, [#allocation3]  }
   0x7   :  { %138 = dma.done.wait [#allocation5], 16  }
   0x8   :  { %139 = vsyncadd [#allocation5], 4294967280 }
   0x9   :  { %140 = dma.done.wait [#allocation3], 64  }
   0xa   :  { %141 = vsyncadd [#allocation3], 4294967232 }
   0xb   :  { %38 = sfence }
   0xc   :  { %s40_s18 = sld [smem:[#allocation2]]  ;;  %v39_v0 = vld [vmem:[#allocation6] sm:$0xf]  ;;  %v50_v4 = vlaneseq  ;;  %s146_s1 = smov [#allocation7]  }
   0xd   :  { %s73_s19 = sld [smem:[#allocation2 + $0x1]]  ;;  %s60_s20 = sshll.u32 %s146_s1, 4  ;;  %s61_s20 = int_to_ptr.vmem [resolvable:$true] %s60_s20 }
   0xe   :  { %s74_s0 = sld [smem:[#allocation2 + $0x2]]  ;;  %s62_s23 = sshll.u32 %s173_s2, 4  ;;  %vm52_vm0 = vcmp.lt.s32.totalorder %v50_v4, 512  ;;  %s63_s23 = int_to_ptr.hbm [resolvable:$true] %s62_s23 }
  0x12   :  { %v41_v1 = vstv %s40_s18 }
  0x13   :  { %v42_v2 = vmul.f32 %v41_v1, %v39_v0  ;;  %v44_v3 = vstv %s73_s19 }
  0x14   :  { %v48_v6 = vstv %s74_s0 }
  0x15   :  { %v45_v5 = vadd.f32 %v44_v3, %v42_v2 }
  0x17   :  { %v46_v7 = vmul.f32 %v45_v5, %v39_v0 }
  0x19   :  { %v49_v8 = vadd.f32 %v48_v6, %v46_v7 }
  0x1b   :  { %54 = vst.msk [vmem:[#allocation7] sm:$0xf] %vm52_vm0, %v49_v8 }
  0x1c   :  { %65 = dma.vmem_to_hbm [thread:$0]  %s61_s20, 64, %s63_s23, [#allocation4]  }
  0x1d   :  { %142 = dma.done.wait [#allocation4], 64  }
  0x1e   :  { %143 = vsyncadd [#allocation4], 4294967232 }
  0x1f   :  { %70 = vsyncpa [#allocation3], 1 }
  0x20   :  { %71 = vsyncpa [#allocation4], 1 }
  0x21   :  { %72 = vsyncpa [#allocation5], 1 }

</bundles_post_ra>
